<compile_context>
chip_gen: v7x
topology: tpu7x:2x2x1
jax: 0.10.0
libtpu: 0.0.40
codegen_flags: <defaults>
</compile_context>

<pallas_src>
import functools

import jax
import jax.numpy as jnp
from jax.experimental import pallas as pl
from jax.experimental.pallas import tpu as pltpu

_LANE = 128
_TARGET_BLOCK_BYTES = 4 * 1024 * 1024   # ~4 MiB/block -> 3 arrays * 2 bufs = 24 MiB VMEM
_VMEM_LIMIT_BYTES = 32 * 1024 * 1024    # explicit: covers v5e's 16 MiB scoped default
_MIN_PALLAS_ELEMS = 1 << 20             # below this, fused XLA elementwise beats a kernel launch
_MIN_GRID_STEPS = 4                     # >= 2 steps per TensorCore on v7x (2 TCs)


def _ceil_div(a, b):
    return -(-a // b)


def _round_up(a, b):
    return _ceil_div(a, b) * b


def _sublane_multiple(dtype):
    # f32 -> 8, bf16/f16 -> 16, int8/fp8 -> 32 (sub-32-bit dtypes pack along sublanes).
    itemsize = jnp.dtype(dtype).itemsize
    return max(8, 8 * (4 // max(1, itemsize)))


def _compute_dtype(dtype):
    dt = jnp.dtype(dtype)
    if jnp.issubdtype(dt, jnp.floating) and dt.itemsize < 4:
        return jnp.float32     # blend low-precision floats in f32 (free, better numerics)
    return dt


def _residual_kernel(x_last_ref, x_prev_ref, o_ref, *, alpha, one_minus_alpha,
                     compute_dtype):
    # out = (1 - alpha) * Xs[-1] + alpha * Xs[-2], elementwise on the VPU.
    x_last = x_last_ref[...].astype(compute_dtype)
    x_prev = x_prev_ref[...].astype(compute_dtype)
    o_ref[...] = (one_minus_alpha * x_last + alpha * x_prev).astype(o_ref.dtype)


def _lane_dense_layout(total, dtype):
    """Pick a lane-dense (rows, cols, block_rows) reshape, or None for jnp fallback.

    Preference order: even division of rows (no ragged/masked last block),
    then >= _MIN_GRID_STEPS grid steps, then wider lanes.
    Returns None if only a single grid step would result (jnp path is better).
    """
    sub = _sublane_multiple(dtype)
    itemsize = jnp.dtype(dtype).itemsize

    best = None
    for cols in (32768, 16384, 8192, 4096, 2048, 1024, 512, 256, _LANE):
        if total % cols != 0:
            continue
        rows = total // cols
        if rows < 2 * sub:
            continue  # cannot form >= 2 sublane-aligned row blocks at this width

        # Biggest row block near the byte budget...
        target_rows = max(sub, (_TARGET_BLOCK_BYTES // (cols * itemsize)) // sub * sub)
        # ...but keep >= _MIN_GRID_STEPS steps so both v7x TCs get pipelined work.
        floor_rows = _round_up(_ceil_div(rows, _MIN_GRID_STEPS), sub)
        block_rows = max(sub, min(target_rows, floor_rows))

        # Prefer a block_rows that divides rows evenly (unmasked writeback),
        # as long as it does not shrink the block by more than 2x.
        if rows % block_rows != 0:
            for br in range(block_rows - sub, sub - 1, -sub):
                if rows % br == 0:
                    if br >= max(sub, block_rows // 2):
                        block_rows = br
                    break

        n_steps = _ceil_div(rows, block_rows)
        if n_steps < 2:
            continue  # single-block kernel: jnp fallback wins

        key = (rows % block_rows == 0, n_steps >= _MIN_GRID_STEPS, cols)
        if best is None or key > best[0]:
            best = (key, (rows, cols, block_rows))

    return None if best is None else best[1]


def residual_connection(Xs, alpha=0.5, *, donate_last=False,
                        min_pallas_elems=_MIN_PALLAS_ELEMS):
    """Pallas implementation of ResidualConnection.forward(Xs).

    Note: `donate_last=True` only reduces memory footprint (output aliases
    Xs[-1]); it does not reduce the 2-read + 1-write HBM traffic, and it is
    only safe if the caller never reads Xs[-1] afterwards.  When the blend can
    be fused into the op producing Xs[-1], the jnp path (taken for small /
    single-block inputs) is the real bandwidth optimization.
    """
    assert len(Xs) >= 1
    if len(Xs) == 1:
        return Xs[-1]

    x_last, x_prev = Xs[-1], Xs[-2]
    assert x_last.shape == x_prev.shape and x_last.dtype == x_prev.dtype
    alpha = float(alpha)
    one_minus_alpha = float(1.0 - alpha)

    orig_shape = x_last.shape
    total = x_last.size
    layout = None if total < min_pallas_elems else _lane_dense_layout(total, x_last.dtype)

    # Small, non-lane-aligned, or single-block inputs: plain jnp so XLA can
    # fuse the blend into surrounding GNN ops (removes an HBM round-trip).
    if layout is None:
        cdt = _compute_dtype(x_last.dtype)
        out = (one_minus_alpha * x_last.astype(cdt)
               + alpha * x_prev.astype(cdt)).astype(x_last.dtype)
        return out

    rows, cols, block_rows = layout
    x_last2 = x_last.reshape(rows, cols)
    x_prev2 = x_prev.reshape(rows, cols)

    grid = (_ceil_div(rows, block_rows),)
    blk = pl.BlockSpec((block_rows, cols), lambda i: (i, 0))

    out2 = pl.pallas_call(
        functools.partial(_residual_kernel, alpha=alpha,
                          one_minus_alpha=one_minus_alpha,
                          compute_dtype=_compute_dtype(x_last.dtype)),
        out_shape=jax.ShapeDtypeStruct((rows, cols), x_last.dtype),
        grid=grid,
        in_specs=[blk, blk],
        out_specs=blk,
        input_output_aliases=({0: 0} if donate_last else {}),
        compiler_params=pltpu.CompilerParams(
            dimension_semantics=("parallel",),
            vmem_limit_bytes=_VMEM_LIMIT_BYTES,
        ),
    )(x_last2, x_prev2)
    return out2.reshape(orig_shape)


if __name__ == "__main__":
    key = jax.random.PRNGKey(0)
    k0, k1, k2, k3, k4, k5, k6, k7, k8 = jax.random.split(key, 9)

    alpha = 0.5

    # Case 1: GNN-style node feature matrices on the Pallas path
    # (min_pallas_elems=0 to force the kernel at this small test size).
    # 512*256 elems -> lane-dense (32, 4096) slab, 4 even (8, 4096) row blocks.
    N, D = 512, 256
    x0 = jax.random.normal(k0, (N, D), dtype=jnp.float32)
    x1 = jax.random.normal(k1, (N, D), dtype=jnp.float32)
    x2 = jax.random.normal(k2, (N, D), dtype=jnp.float32)

    out = residual_connection([x0, x1, x2], alpha=alpha, min_pallas_elems=0)
    out = jax.block_until_ready(out)
    ref = (1.0 - alpha) * x2 + alpha * x1
    assert out.shape == (N, D)
    assert jnp.allclose(out, ref, atol=1e-6, rtol=1e-6)

    # Case 2: single-element list -> identity passthrough.
    out1 = residual_connection([x0], alpha=alpha)
    out1 = jax.block_until_ready(out1)
    assert jnp.allclose(out1, x0)

    # Case 3: tiny / non-128-aligned input -> jnp fallback path (still correct).
    a = jax.random.normal(k3, (7, 5), dtype=jnp.float32)
    b = jax.random.normal(k4, (7, 5), dtype=jnp.float32)
    out_small = jax.block_until_ready(residual_connection([a, b], alpha=0.25))
    ref_small = (1.0 - 0.25) * b + 0.25 * a
    assert jnp.allclose(out_small, ref_small, atol=1e-6, rtol=1e-6)

    # Case 4: ragged last block on the Pallas path (rows=20, block_rows=8 ->
    # 3 steps, last block partial -> masked writeback).
    c = jax.random.normal(k5, (20, 128), dtype=jnp.float32)
    d = jax.random.normal(k6, (20, 128), dtype=jnp.float32)
    out_rag = jax.block_until_ready(
        residual_connection([c, d], alpha=0.3, min_pallas_elems=0))
    ref_rag = (1.0 - 0.3) * d + 0.3 * c
    assert jnp.allclose(out_rag, ref_rag, atol=1e-6, rtol=1e-6)

    # Case 5: bf16 inputs -> f32 in-kernel blend, cast back to bf16.
    e = jax.random.normal(k7, (64, 512), dtype=jnp.float32).astype(jnp.bfloat16)
    f = jax.random.normal(k8, (64, 512), dtype=jnp.float32).astype(jnp.bfloat16)
    out_bf = jax.block_until_ready(
        residual_connection([e, f], alpha=alpha, min_pallas_elems=0))
    ref_bf = ((1.0 - alpha) * f.astype(jnp.float32)
              + alpha * e.astype(jnp.float32)).astype(jnp.bfloat16)
    assert out_bf.dtype == jnp.bfloat16
    assert jnp.allclose(out_bf.astype(jnp.float32), ref_bf.astype(jnp.float32),
                        atol=1e-2, rtol=1e-2)

    print("KERNEL_OK")
</pallas_src>

<mosaic_0001>
module attributes {stable_mosaic.version = 11 : i64} {
  func.func @_residual_kernel(%arg0: i32, %arg1: memref<8x4096xf32, #tpu.memory_space<vmem>>, %arg2: memref<8x4096xf32, #tpu.memory_space<vmem>>, %arg3: memref<8x4096xf32, #tpu.memory_space<vmem>>) attributes {dimension_semantics = [#tpu.dimension_semantics<parallel>], iteration_bounds = array<i64: 4>, scalar_prefetch = 0 : i64, scratch_operands = 0 : i64, tpu.core_type = #tpu.core_type<tc>, window_params = [{transform_indices = @transform_0, window_bounds = array<i64: 8, 4096>}, {transform_indices = @transform_1, window_bounds = array<i64: 8, 4096>}, {transform_indices = @transform_2, window_bounds = array<i64: 8, 4096>}]} {
    %c0 = arith.constant 0 : index
    %c0_0 = arith.constant 0 : index
    %0 = vector.load %arg1[%c0, %c0_0] : memref<8x4096xf32, #tpu.memory_space<vmem>>, vector<8x4096xf32>
    %c0_1 = arith.constant 0 : index
    %c0_2 = arith.constant 0 : index
    %1 = vector.load %arg2[%c0_1, %c0_2] : memref<8x4096xf32, #tpu.memory_space<vmem>>, vector<8x4096xf32>
    %cst = arith.constant 5.000000e-01 : f32
    %2 = vector.broadcast %cst : f32 to vector<8x4096xf32>
    %3 = arith.mulf %2, %0 : vector<8x4096xf32>
    %cst_3 = arith.constant 5.000000e-01 : f32
    %4 = vector.broadcast %cst_3 : f32 to vector<8x4096xf32>
    %5 = arith.mulf %4, %1 : vector<8x4096xf32>
    %6 = arith.addf %3, %5 : vector<8x4096xf32>
    %c0_4 = arith.constant 0 : index
    %c0_5 = arith.constant 0 : index
    %7 = vector.load %arg3[%c0_4, %c0_5] : memref<8x4096xf32, #tpu.memory_space<vmem>>, vector<8x4096xf32>
    tpu.vector_store %arg3[%c0_4, %c0_5], %6 {strides = array<i32>} : memref<8x4096xf32, #tpu.memory_space<vmem>>, vector<8x4096xf32>,
    return
  }
  func.func @transform_0(%arg0: i32) -> (i32, i32) {
    %c0_i32 = arith.constant 0 : i32
    %c0_i32_0 = arith.constant 0 : i32
    return %arg0, %c0_i32 : i32, i32
  }
  func.func @transform_1(%arg0: i32) -> (i32, i32) {
    %c0_i32 = arith.constant 0 : i32
    %c0_i32_0 = arith.constant 0 : i32
    return %arg0, %c0_i32 : i32, i32
  }
  func.func @transform_2(%arg0: i32) -> (i32, i32) {
    %c0_i32 = arith.constant 0 : i32
    %c0_i32_0 = arith.constant 0 : i32
    return %arg0, %c0_i32 : i32, i32
  }
}

</mosaic_0001>

<bundles_post_ra>
// kernel: tpu_custom_call.1
= control target key start
LH: loop header
LB: loop body
LE: loop exit
PB: predicated region body
PF: predicated region fallthrough
CT: control target
= control target key end

     0   :  { %7 = vsyncpa [#allocation3], 0  ;;  %s1035_s0 = inlined_call_operand.hbm [shape: f32[32,4096], index: 0, kind: input, shape index: {}]   ;;  %s1036_s1 = inlined_call_operand.hbm [shape: f32[32,4096], index: 1, kind: input, shape index: {}]   ;;  %s1037_s2 = inlined_call_operand.hbm [shape: f32[32,4096], index: 2, kind: output, shape index: {}]  }
   0x1   :  { %9 = vsyncpa [#allocation3 + $0x1], 0 }
   0x2   :  { %10 = vsyncpa [#allocation6], 0 }
   0x3   :  { %12 = vsyncpa [#allocation6 + $0x1], 0 }
   0x4   :  { %13 = vsyncpa [#allocation4], 0 }
   0x5   :  { %15 = vsyncpa [#allocation4 + $0x1], 0  ;;  %s720_s9 = smov 0   ;;  %s722_s10 = smov 0  }
   0x6   :  { %s724_s11 = smov 0   ;;  %s726_s12 = smov 0  }
   0x7 LB: > { %s741_s13 = sadd.s32 4294967295, %s700_s12   ;;  %s498_s14 = sadd.s32 4294967294, %s700_s12   ;;  %s700_s12 = sphi %s726_s12, %s1055_s12   ;;  %s696_s11 = sphi %s724_s11, %s1054_s11   ;;  %s692_s10 = sphi %s722_s10, %s1053_s10   ;;  %s688_s9 = sphi %s720_s9, %s1052_s9  }
   0x8   : > { %s745_s15 = sadd.s32 1, %s700_s12   ;;  %s28_s16 = sadd.s32 1, %s696_s11 }
   0x9   : > { %s25_s17 = ssub.s32 %s700_s12, %s745_s15  ;;  %p35_p0 = scmp.ne.s32.totalorder %s696_s11, %s692_s10 }
   0xa   : > { %p26_p1 = scmp.eq.s32.totalorder %s25_s17, 0  ;;  %p36_p2 = scmp.eq.s32.totalorder %s700_s12, 0 }
   0xb   : > { %p41_p3 = scmp.ne.s32.totalorder %s692_s10, %s688_s9  ;;  %p42_p4 = scmp.eq.s32.totalorder %s741_s13, 0 }
   0xc   : > { %s757_s18 = scalar_select %p26_p1, %s696_s11, %s28_s16  }
   0xd   : > { %p759_p5 = por %p36_p2, %p35_p0  ;;  %p763_p6 = por %p42_p4, %p41_p3 }
   0xe   : > { %p91_p7 = scmp.eq.s32.totalorder %s741_s13, 3  ;;  %p97_p8 = scmp.eq.s32.totalorder %s498_s14, 3 }
   0xf   : > { %s1041_s20 = scalar_select %p763_p6, 1, 0 }
  0x10   : > { %p536_p9 = scmp.lt.s32.totalorder %s700_s12, 4  ;;  %p769_p10 = por %p91_p7, %p35_p0 }
  0x11   : > { %p773_p11 = por %p97_p8, %p41_p3  ;;  %s778_s23 = sand.u32 1, %s696_s11  }
  0x12   : > { %s1042_s21 = scalar_select %p769_p10, 1, 0 }
  0x13   : > { %s1043_s22 = scalar_select %p773_p11, 1, 0 }
  0x14   : > { %s516_s24 = sshll.u32 %s700_s12, 12  ;;  %s501_s25 = sshll.u32 %s778_s23, 8 }
  0x15   : > { %s787_s28 = scalar_lea.hbm %s1035_s0, %s516_s24  ;;  %s121_s29 = scalar_lea.vmem [#allocation2], %s501_s25 }
  0x16   : > { %s129_s30 = sshll.u32 %s121_s29, 4  ;;  %p793_p12 = pnand %p536_p9, %p759_p5  ;;  %s797_s30 = int_to_ptr.vmem [resolvable:$true] %s129_s30 }
  0x17   : > { %s118_s4 = scalar_lea.sflag [#allocation3], %s778_s23  ;;  %s570_s5 = scalar_lea.hbm %s787_s28, 4096 }
  0x18   : > { %p571_p1 = scmp.ne.s32.totalorder %s787_s28, %s570_s5  ;;  %p572_p2 = pneg %p793_p12 }
  0x19   : > { %s575_s8 = scalar_lea.hbm %s1035_s0, 16384  ;;  %p576_p5 = scmp.lt.u32.totalorder %s787_s28, %s1035_s0 }
  0x1a   : > { %p573_p3 = pnand %p572_p2, %p571_p1  ;;  %p577_p7 = scmp.lt.u32.totalorder %s575_s8, %s570_s5 }
  0x1b   : > { %p579_p9 = scmp.lt.u32.totalorder %s570_s5, %s787_s28 }
  0x1c   : > { %p574_p4 = pneg %p573_p3  ;;  %p578_p8 = por %p577_p7, %p576_p5 }
  0x1e   : > { %p580_p13 = por %p579_p9, %p578_p8 }
  0x20   : > { %p581_p0 = pnand %p580_p13, %p574_p4 }
  0x22   : > { %584 = shalt.err (!%p581_p0)
}
  0x23   : > { %s585_s17 = scalar_lea.vmem %s797_s30, 4096  ;;  %s702_s19 = smov [#allocation2]  }
  0x24   : > { %p586_p1 = scmp.ne.s32.totalorder %s797_s30, %s585_s17  ;;  %s590_s26 = sshll.u32 %s702_s19, 4  ;;  %s591_s26 = int_to_ptr.vmem [resolvable:$false] %s590_s26 }
  0x25   : > { %s592_s27 = scalar_lea.vmem %s591_s26, 8192  ;;  %p593_p10 = scmp.lt.s32.totalorder %s797_s30, %s591_s26 }
  0x26   : > { %p588_p3 = pnand %p586_p1, %p572_p2  ;;  %p594_p5 = scmp.lt.s32.totalorder %s592_s27, %s585_s17 }
  0x28   : > { %p589_p11 = pneg %p588_p3  ;;  %p595_p7 = por %p594_p5, %p593_p10 }
  0x2a   : > { %p596_p8 = pnand %p595_p7, %p589_p11 }
  0x2c   : > { %599 = shalt.err (!%p596_p8)
}
  0x2d   : > { %528 = dma.hbm_to_vmem [thread:$0]  (!%p793_p12), %s787_s28, 4096, %s797_s30, %s118_s4  }
  0x2e   : > { %p1045_p13 = scmp.lt.s32.totalorder %s700_s12, 5  ;;  %p1046_p0 = scmp.ge.s32.totalorder %s700_s12, 1 }
  0x2f   : > { %s840_s7 = scalar_lea.hbm %s1036_s1, %s516_s24  ;;  %s140_s8 = scalar_lea.vmem [#allocation5], %s501_s25 }
  0x30   : > { %p831_p4 = pnand %p1046_p0, %p1045_p13  ;;  %s148_s14 = sshll.u32 %s140_s8, 4  ;;  %s149_s14 = int_to_ptr.vmem [resolvable:$true] %s148_s14 }
  0x31   : > { %s137_s28 = scalar_lea.sflag [#allocation6], %s778_s23  ;;  %s600_s30 = scalar_lea.hbm %s840_s7, 4096 }
  0x32   : > { %s1047_s29 = scalar_select %p831_p4, 1, 0 }
  0x33   : > { %p601_p10 = scmp.ne.s32.totalorder %s840_s7, %s600_s30  ;;  %s605_s24 = scalar_lea.hbm %s1036_s1, 16384 }
  0x34   : > { %p606_p1 = scmp.lt.u32.totalorder %s840_s7, %s1036_s1  ;;  %p607_p3 = scmp.lt.u32.totalorder %s605_s24, %s600_s30 }
  0x35   : > { %p603_p11 = pnand %p601_p10, %p572_p2  ;;  %p609_p7 = scmp.lt.u32.totalorder %s600_s30, %s840_s7 }
  0x36   : > { %p608_p5 = por %p607_p3, %p606_p1 }
  0x37   : > { %p604_p9 = pneg %p603_p11 }
  0x38   : > { %p610_p8 = por %p609_p7, %p608_p5 }
  0x3a   : > { %p611_p13 = pnand %p610_p8, %p604_p9 }
  0x3c   : > { %614 = shalt.err (!%p611_p13)
}
  0x3d   : > { %s615_s23 = scalar_lea.vmem %s149_s14, 4096  ;;  %s703_s25 = smov [#allocation5]  }
  0x3e   : > { %p616_p0 = scmp.ne.s32.totalorder %s149_s14, %s615_s23  ;;  %s620_s26 = sshll.u32 %s703_s25, 4  ;;  %s621_s26 = int_to_ptr.vmem [resolvable:$false] %s620_s26 }
  0x3f   : > { %s622_s27 = scalar_lea.vmem %s621_s26, 8192  ;;  %p623_p6 = scmp.lt.s32.totalorder %s149_s14, %s621_s26 }
  0x40   : > { %p618_p10 = pnand %p616_p0, %p572_p2  ;;  %p624_p4 = scmp.lt.s32.totalorder %s622_s27, %s615_s23 }
  0x42   : > { %p619_p11 = pneg %p618_p10  ;;  %p625_p1 = por %p624_p4, %p623_p6 }
  0x44   : > { %p626_p3 = pnand %p625_p1, %p619_p11 }
  0x46   : > { %629 = shalt.err (!%p626_p3)
}
  0x47   : > { %531 = dma.hbm_to_vmem [thread:$0]  (!%p793_p12), %s840_s7, 4096, %s149_s14, %s137_s28  }
  0x48   : > { %p1048_p9 = scmp.ne.s32.totalorder %s1047_s29, 0 }
  0x49   : > { %s867_s5 = sand.u32 (!%p1048_p9), 1, %s692_s10   ;;  %p1049_p6 = scmp.ne.s32.totalorder (!%p1048_p9), %s1041_s20, 0 }
  0x4a   : > { %157 = sbr.rel (%p1048_p9) target bundleno = 132 (0x84), region = 28  ;;  %s870_s6 = sshll.u32 (!%p1048_p9), %s867_s5, 8 }
  0x4b   : > { %s160_s8 = scalar_lea.sflag (!%p1048_p9), [#allocation3], %s867_s5  ;;  %s874_s30 = scalar_lea.vmem (!%p1048_p9), [#allocation2], %s870_s6 }
  0x51   : > { %675 = dma.done.wait (%p1049_p6), %s160_s8, 4096  }
  0x52   : > { %677 = vsyncadd (%p1049_p6), %s160_s8, 4294963200  ;;  %s169_s3 = scalar_lea.sflag [#allocation6], %s867_s5  ;;  %s882_s29 = scalar_lea.vmem [#allocation5], %s870_s6 }
  0x53   : > { %679 = dma.done.wait (%p1049_p6), %s169_s3, 4096  }
  0x54   : > { %681 = vsyncadd (%p1049_p6), %s169_s3, 4294963200  ;;  %v198_v0 = vld [vmem:[%s874_s30] sm:$0xff]  ;;  %v199_v2 = vld [vmem:[%s874_s30 + $0x8] sm:$0xff]  ;;  %s904_s20 = scalar_lea.vmem [#allocation7], %s870_s6  ;;  %s518_s7 = sshll.u32 %s741_s13, 12 }
  0x55   : > { %v230_v1 = vld [vmem:[%s882_s29] sm:$0xff]  ;;  %v262_v3 = vmul.f32 0.5, %v198_v0  ;;  %v231_v5 = vld [vmem:[%s882_s29 + $0x8] sm:$0xff]  ;;  %v263_v6 = vmul.f32 0.5, %v199_v2  ;;  %v200_v7 = vld [vmem:[%s874_s30 + $0x10] sm:$0xff]  ;;  %s405_s14 = sshll.u32 %s904_s20, 4  ;;  %s989_s16 = scalar_lea.hbm %s1037_s2, %s518_s7  ;;  %s991_s14 = int_to_ptr.vmem [resolvable:$true] %s405_s14 }
  0x56   : > { %v294_v4 = vmul.f32 0.5, %v230_v1  ;;  %v232_v8 = vld [vmem:[%s882_s29 + $0x10] sm:$0xff]  ;;  %v295_v9 = vmul.f32 0.5, %v231_v5  ;;  %v264_v10 = vmul.f32 0.5, %v200_v7  ;;  %v201_v12 = vld [vmem:[%s874_s30 + $0x18] sm:$0xff]  ;;  %v202_v14 = vld [vmem:[%s874_s30 + $0x20] sm:$0xff] }
  0x57   : > { %v296_v11 = vmul.f32 0.5, %v232_v8  ;;  %v233_v13 = vld [vmem:[%s882_s29 + $0x18] sm:$0xff]  ;;  %v265_v16 = vmul.f32 0.5, %v201_v12  ;;  %v234_v18 = vld [vmem:[%s882_s29 + $0x20] sm:$0xff]  ;;  %v266_v19 = vmul.f32 0.5, %v202_v14  ;;  %v203_v20 = vld [vmem:[%s874_s30 + $0x28] sm:$0xff] }
  0x58   : > { %v326_v15 = vadd.f32 %v294_v4, %v262_v3  ;;  %v297_v17 = vmul.f32 0.5, %v233_v13  ;;  %v235_v21 = vld [vmem:[%s882_s29 + $0x28] sm:$0xff]  ;;  %v327_v22 = vadd.f32 %v295_v9, %v263_v6  ;;  %v298_v24 = vmul.f32 0.5, %v234_v18  ;;  %v204_v26 = vld [vmem:[%s874_s30 + $0x30] sm:$0xff]  ;;  %v205_v28 = vld [vmem:[%s874_s30 + $0x38] sm:$0xff]  ;;  %s391_s13 = scalar_lea.sflag [#allocation4], %s867_s5 }
  0x59   : > { %v328_v23 = vadd.f32 %v296_v11, %v264_v10  ;;  %v267_v25 = vmul.f32 0.5, %v203_v20  ;;  %v236_v27 = vld [vmem:[%s882_s29 + $0x30] sm:$0xff]  ;;  %v299_v30 = vmul.f32 0.5, %v235_v21  ;;  %v268_v31 = vmul.f32 0.5, %v204_v26  ;;  %v237_v33 = vld [vmem:[%s882_s29 + $0x38] sm:$0xff]  ;;  %v206_v34 = vld [vmem:[%s874_s30 + $0x40] sm:$0xff] }
  0x5a   : > { %358 = vst [vmem:[%s904_s20] sm:$0xff] %v326_v15  ;;  %v329_v29 = vadd.f32 %v297_v17, %v265_v16  ;;  %v300_v32 = vmul.f32 0.5, %v236_v27  ;;  %v238_v35 = vld [vmem:[%s882_s29 + $0x40] sm:$0xff]  ;;  %359 = vst [vmem:[%s904_s20 + $0x8] sm:$0xff] %v327_v22  ;;  %v330_v36 = vadd.f32 %v298_v24, %v266_v19  ;;  %v269_v37 = vmul.f32 0.5, %v205_v28  ;;  %v207_v40 = vld [vmem:[%s874_s30 + $0x48] sm:$0xff]  ;;  %s630_s24 = scalar_lea.vmem %s991_s14, 4096 }
  0x5b   : > { %360 = vst [vmem:[%s904_s20 + $0x10] sm:$0xff] %v328_v23  ;;  %v301_v38 = vmul.f32 0.5, %v237_v33  ;;  %v270_v39 = vmul.f32 0.5, %v206_v34  ;;  %v239_v41 = vld [vmem:[%s882_s29 + $0x48] sm:$0xff]  ;;  %v208_v42 = vld [vmem:[%s874_s30 + $0x50] sm:$0xff]  ;;  %v331_v43 = vadd.f32 %v299_v30, %v267_v25  ;;  %v302_v45 = vmul.f32 0.5, %v238_v35  ;;  %p631_p12 = scmp.ne.s32.totalorder %s991_s14, %s630_s24 }
  0x5c   : > { %361 = vst [vmem:[%s904_s20 + $0x18] sm:$0xff] %v329_v29  ;;  %v332_v44 = vadd.f32 %v300_v32, %v268_v31  ;;  %v271_v46 = vmul.f32 0.5, %v207_v40  ;;  %v240_v47 = vld [vmem:[%s882_s29 + $0x50] sm:$0xff]  ;;  %v209_v48 = vld [vmem:[%s874_s30 + $0x58] sm:$0xff]  ;;  %362 = vst [vmem:[%s904_s20 + $0x20] sm:$0xff] %v330_v36  ;;  %v303_v51 = vmul.f32 0.5, %v239_v41 }
  0x5d   : > { %v241_v49 = vld [vmem:[%s882_s29 + $0x58] sm:$0xff]  ;;  %v333_v50 = vadd.f32 %v301_v38, %v269_v37  ;;  %v272_v52 = vmul.f32 0.5, %v208_v42  ;;  %v304_v53 = vmul.f32 0.5, %v240_v47  ;;  %v210_v54 = vld [vmem:[%s874_s30 + $0x60] sm:$0xff]  ;;  %v211_v56 = vld [vmem:[%s874_s30 + $0x68] sm:$0xff]  ;;  %363 = vst [vmem:[%s904_s20 + $0x28] sm:$0xff] %v331_v43  ;;  %v334_v57 = vadd.f32 %v302_v45, %v270_v39 }
  0x5e   : > { %v242_v55 = vld [vmem:[%s882_s29 + $0x60] sm:$0xff]  ;;  %364 = vst [vmem:[%s904_s20 + $0x30] sm:$0xff] %v332_v44  ;;  %v273_v58 = vmul.f32 0.5, %v209_v48  ;;  %v305_v59 = vmul.f32 0.5, %v241_v49  ;;  %v274_v60 = vmul.f32 0.5, %v210_v54  ;;  %v243_v61 = vld [vmem:[%s882_s29 + $0x68] sm:$0xff]  ;;  %v335_v0 = vadd.f32 %v303_v51, %v271_v46 }
  0x5f   : > { %v212_v62 = vld [vmem:[%s874_s30 + $0x70] sm:$0xff]  ;;  %365 = vst [vmem:[%s904_s20 + $0x38] sm:$0xff] %v333_v50  ;;  %v336_v1 = vadd.f32 %v304_v53, %v272_v52  ;;  %v306_v2 = vmul.f32 0.5, %v242_v55  ;;  %v275_v3 = vmul.f32 0.5, %v211_v56  ;;  %v213_v4 = vld [vmem:[%s874_s30 + $0x78] sm:$0xff]  ;;  %v214_v6 = vld [vmem:[%s874_s30 + $0x80] sm:$0xff] }
  0x60   : > { %v244_v63 = vld [vmem:[%s882_s29 + $0x70] sm:$0xff]  ;;  %v245_v5 = vld [vmem:[%s882_s29 + $0x78] sm:$0xff]  ;;  %366 = vst [vmem:[%s904_s20 + $0x40] sm:$0xff] %v334_v57  ;;  %v337_v7 = vadd.f32 %v305_v59, %v273_v58  ;;  %v307_v8 = vmul.f32 0.5, %v243_v61  ;;  %v276_v9 = vmul.f32 0.5, %v212_v62  ;;  %v246_v11 = vld [vmem:[%s882_s29 + $0x80] sm:$0xff] }
  0x61   : > { %v308_v10 = vmul.f32 0.5, %v244_v63  ;;  %v215_v12 = vld [vmem:[%s874_s30 + $0x88] sm:$0xff]  ;;  %367 = vst [vmem:[%s904_s20 + $0x48] sm:$0xff] %v335_v0  ;;  %368 = vst [vmem:[%s904_s20 + $0x50] sm:$0xff] %v336_v1  ;;  %v338_v14 = vadd.f32 %v306_v2, %v274_v60  ;;  %v277_v15 = vmul.f32 0.5, %v213_v4  ;;  %v309_v16 = vmul.f32 0.5, %v245_v5 }
  0x62   : > { %v247_v13 = vld [vmem:[%s882_s29 + $0x88] sm:$0xff]  ;;  %v278_v17 = vmul.f32 0.5, %v214_v6  ;;  %v216_v18 = vld [vmem:[%s874_s30 + $0x90] sm:$0xff]  ;;  %v217_v20 = vld [vmem:[%s874_s30 + $0x98] sm:$0xff]  ;;  %369 = vst [vmem:[%s904_s20 + $0x58] sm:$0xff] %v337_v7  ;;  %v339_v21 = vadd.f32 %v307_v8, %v275_v3  ;;  %v310_v23 = vmul.f32 0.5, %v246_v11 }
  0x63   : > { %v248_v19 = vld [vmem:[%s882_s29 + $0x90] sm:$0xff]  ;;  %v340_v22 = vadd.f32 %v308_v10, %v276_v9  ;;  %v279_v24 = vmul.f32 0.5, %v215_v12  ;;  %v249_v25 = vld [vmem:[%s882_s29 + $0x98] sm:$0xff]  ;;  %v218_v26 = vld [vmem:[%s874_s30 + $0xa0] sm:$0xff]  ;;  %370 = vst [vmem:[%s904_s20 + $0x60] sm:$0xff] %v338_v14  ;;  %v341_v28 = vadd.f32 %v309_v16, %v277_v15  ;;  %v311_v29 = vmul.f32 0.5, %v247_v13 }
  0x64   : > { %v250_v27 = vld [vmem:[%s882_s29 + $0xa0] sm:$0xff]  ;;  %v280_v30 = vmul.f32 0.5, %v216_v18  ;;  %v312_v31 = vmul.f32 0.5, %v248_v19  ;;  %v219_v32 = vld [vmem:[%s874_s30 + $0xa8] sm:$0xff]  ;;  %v220_v34 = vld [vmem:[%s874_s30 + $0xb0] sm:$0xff]  ;;  %371 = vst [vmem:[%s904_s20 + $0x68] sm:$0xff] %v339_v21  ;;  %v342_v35 = vadd.f32 %v310_v23, %v278_v17 }
  0x65   : > { %v251_v33 = vld [vmem:[%s882_s29 + $0xa8] sm:$0xff]  ;;  %372 = vst [vmem:[%s904_s20 + $0x70] sm:$0xff] %v340_v22  ;;  %v281_v36 = vmul.f32 0.5, %v217_v20  ;;  %v313_v37 = vmul.f32 0.5, %v249_v25  ;;  %v282_v38 = vmul.f32 0.5, %v218_v26  ;;  %v252_v39 = vld [vmem:[%s882_s29 + $0xb0] sm:$0xff]  ;;  %v343_v42 = vadd.f32 %v311_v29, %v279_v24 }
  0x66   : > { %v221_v40 = vld [vmem:[%s874_s30 + $0xb8] sm:$0xff]  ;;  %373 = vst [vmem:[%s904_s20 + $0x78] sm:$0xff] %v341_v28  ;;  %v344_v43 = vadd.f32 %v312_v31, %v280_v30  ;;  %v314_v44 = vmul.f32 0.5, %v250_v27  ;;  %v283_v45 = vmul.f32 0.5, %v219_v32  ;;  %v222_v46 = vld [vmem:[%s874_s30 + $0xc0] sm:$0xff]  ;;  %v223_v48 = vld [vmem:[%s874_s30 + $0xc8] sm:$0xff] }
  0x67   : > { %v253_v41 = vld [vmem:[%s882_s29 + $0xb8] sm:$0xff]  ;;  %v254_v47 = vld [vmem:[%s882_s29 + $0xc0] sm:$0xff]  ;;  %374 = vst [vmem:[%s904_s20 + $0x80] sm:$0xff] %v342_v35  ;;  %v345_v49 = vadd.f32 %v313_v37, %v281_v36  ;;  %v315_v50 = vmul.f32 0.5, %v251_v33  ;;  %v284_v51 = vmul.f32 0.5, %v220_v34  ;;  %v316_v52 = vmul.f32 0.5, %v252_v39 }
  0x68   : > { %v255_v53 = vld [vmem:[%s882_s29 + $0xc8] sm:$0xff]  ;;  %v224_v54 = vld [vmem:[%s874_s30 + $0xd0] sm:$0xff]  ;;  %375 = vst [vmem:[%s904_s20 + $0x88] sm:$0xff] %v343_v42  ;;  %376 = vst [vmem:[%s904_s20 + $0x90] sm:$0xff] %v344_v43  ;;  %v346_v56 = vadd.f32 %v314_v44, %v282_v38  ;;  %v285_v57 = vmul.f32 0.5, %v221_v40  ;;  %v317_v58 = vmul.f32 0.5, %v253_v41 }
  0x69   : > { %v256_v55 = vld [vmem:[%s882_s29 + $0xd0] sm:$0xff]  ;;  %v286_v59 = vmul.f32 0.5, %v222_v46  ;;  %v225_v60 = vld [vmem:[%s874_s30 + $0xd8] sm:$0xff]  ;;  %v226_v62 = vld [vmem:[%s874_s30 + $0xe0] sm:$0xff]  ;;  %377 = vst [vmem:[%s904_s20 + $0x98] sm:$0xff] %v345_v49  ;;  %v347_v63 = vadd.f32 %v315_v50, %v283_v45  ;;  %v348_v0 = vadd.f32 %v316_v52, %v284_v51  ;;  %v318_v1 = vmul.f32 0.5, %v254_v47 }
  0x6a   : > { %v257_v61 = vld [vmem:[%s882_s29 + $0xd8] sm:$0xff]  ;;  %v287_v2 = vmul.f32 0.5, %v223_v48  ;;  %v258_v3 = vld [vmem:[%s882_s29 + $0xe0] sm:$0xff]  ;;  %v227_v4 = vld [vmem:[%s874_s30 + $0xe8] sm:$0xff]  ;;  %378 = vst [vmem:[%s904_s20 + $0xa0] sm:$0xff] %v346_v56  ;;  %v349_v5 = vadd.f32 %v317_v58, %v285_v57  ;;  %v319_v6 = vmul.f32 0.5, %v255_v53 }
  0x6b   : > { %v288_v7 = vmul.f32 0.5, %v224_v54  ;;  %v320_v8 = vmul.f32 0.5, %v256_v55  ;;  %v259_v9 = vld [vmem:[%s882_s29 + $0xe8] sm:$0xff]  ;;  %v228_v10 = vld [vmem:[%s874_s30 + $0xf0] sm:$0xff]  ;;  %379 = vst [vmem:[%s904_s20 + $0xa8] sm:$0xff] %v347_v63  ;;  %380 = vst [vmem:[%s904_s20 + $0xb0] sm:$0xff] %v348_v0  ;;  %v350_v12 = vadd.f32 %v318_v1, %v286_v59 }
  0x6c   : > { %v260_v11 = vld [vmem:[%s882_s29 + $0xf0] sm:$0xff]  ;;  %v289_v13 = vmul.f32 0.5, %v225_v60  ;;  %v321_v14 = vmul.f32 0.5, %v257_v61  ;;  %v290_v15 = vmul.f32 0.5, %v226_v62  ;;  %v229_v16 = vld [vmem:[%s874_s30 + $0xf8] sm:$0xff]  ;;  %381 = vst [vmem:[%s904_s20 + $0xb8] sm:$0xff] %v349_v5  ;;  %v351_v18 = vadd.f32 %v319_v6, %v287_v2 }
  0x6d   : > { %v261_v17 = vld [vmem:[%s882_s29 + $0xf8] sm:$0xff]  ;;  %v352_v19 = vadd.f32 %v320_v8, %v288_v7  ;;  %v322_v20 = vmul.f32 0.5, %v258_v3  ;;  %v291_v21 = vmul.f32 0.5, %v227_v4  ;;  %382 = vst [vmem:[%s904_s20 + $0xc0] sm:$0xff] %v350_v12  ;;  %v323_v23 = vmul.f32 0.5, %v259_v9  ;;  %p1050_p2 = scmp.ne.s32.totalorder %s1042_s21, 0 }
  0x6e   : > { %v353_v22 = vadd.f32 %v321_v14, %v289_v13  ;;  %v292_v24 = vmul.f32 0.5, %v228_v10  ;;  %v324_v25 = vmul.f32 0.5, %v260_v11  ;;  %383 = vst [vmem:[%s904_s20 + $0xc8] sm:$0xff] %v351_v18  ;;  %v293_v27 = vmul.f32 0.5, %v229_v16  ;;  %s704_s17 = smov [#allocation7]  }
  0x6f   : > { %384 = vst [vmem:[%s904_s20 + $0xd0] sm:$0xff] %v352_v19  ;;  %v354_v26 = vadd.f32 %v322_v20, %v290_v15  ;;  %v325_v28 = vmul.f32 0.5, %v261_v17  ;;  %v355_v29 = vadd.f32 %v323_v23, %v291_v21  ;;  %p632_p4 = pnand %p631_p12, %p1050_p2  ;;  %s634_s19 = sshll.u32 %s704_s17, 4  ;;  %s635_s19 = int_to_ptr.vmem [resolvable:$false] %s634_s19 }
  0x70   : > { %385 = vst [vmem:[%s904_s20 + $0xd8] sm:$0xff] %v353_v22  ;;  %v356_v30 = vadd.f32 %v324_v25, %v292_v24  ;;  %s636_s23 = scalar_lea.vmem %s635_s19, 8192  ;;  %p637_p7 = scmp.lt.s32.totalorder %s991_s14, %s635_s19 }
  0x71   : > { %386 = vst [vmem:[%s904_s20 + $0xe0] sm:$0xff] %v354_v26  ;;  %v357_v31 = vadd.f32 %v325_v28, %v293_v27  ;;  %387 = vst [vmem:[%s904_s20 + $0xe8] sm:$0xff] %v355_v29  ;;  %p633_p5 = pneg %p632_p4  ;;  %p638_p8 = scmp.lt.s32.totalorder %s636_s23, %s630_s24 }
  0x72   : > { %388 = vst [vmem:[%s904_s20 + $0xf0] sm:$0xff] %v356_v30 }
  0x73   : > { %389 = vst [vmem:[%s904_s20 + $0xf8] sm:$0xff] %v357_v31  ;;  %p639_p13 = por %p638_p8, %p637_p7 }
  0x75   : > { %p640_p0 = pnand %p639_p13, %p633_p5 }
  0x77   : > { %643 = shalt.err (!%p640_p0)
}
  0x78   : > { %s644_s25 = scalar_lea.hbm %s989_s16, 4096  ;;  %s648_s5 = scalar_lea.hbm %s1037_s2, 16384 }
  0x79   : > { %p645_p10 = scmp.ne.s32.totalorder %s989_s16, %s644_s25  ;;  %p649_p3 = scmp.lt.u32.totalorder %s989_s16, %s1037_s2 }
  0x7a   : > { %p650_p9 = scmp.lt.u32.totalorder %s648_s5, %s644_s25  ;;  %p652_p12 = scmp.lt.u32.totalorder %s644_s25, %s989_s16 }
  0x7b   : > { %p646_p11 = pnand %p645_p10, %p1050_p2 }
  0x7c   : > { %p651_p6 = por %p650_p9, %p649_p3 }
  0x7d   : > { %p647_p1 = pneg %p646_p11 }
  0x7e   : > { %p653_p4 = por %p652_p12, %p651_p6 }
  0x80   : > { %p654_p5 = pnand %p653_p4, %p647_p1 }
  0x82   : > { %657 = shalt.err (!%p654_p5)
}
  0x83   : > { %523 = dma.vmem_to_hbm [thread:$0]  (%p1050_p2), %s991_s14, 4096, %s989_s16, %s391_s13  }
  0x84 PF: > { %p537_p7 = scmp.ge.s32.totalorder %s700_s12, 2  ;;  %s417_s30 = sand.u32 1, %s688_s9  }
  0x85   : > { %p1051_p8 = scmp.ne.s32.totalorder %s1043_s22, 0  ;;  %s418_s3 = scalar_lea.sflag [#allocation4], %s417_s30 }
  0x87   : > { %p533_p13 = pnand %p537_p7, %p1051_p8 }
  0x89   : > { %683 = dma.done.wait (!%p533_p13), %s418_s3, 4096  }
  0x8a   : > { %685 = vsyncadd (!%p533_p13), %s418_s3, 4294963200  ;;  %p18_p0 = scmp.ge.s32.totalorder %s745_s15, 6   ;;  %s1052_s9 = smov %s692_s10 }
  0x8b   : > { %s1053_s10 = smov %s696_s11  ;;  %s1054_s11 = smov %s757_s18 }
  0x8c   : > { %s1055_s12 = smov %s745_s15  ;;  %20 = sbr.rel (!%p18_p0) target bundleno = 7 (0x7), region = 86 }
  0x93   :  { %423 = vsyncpa [#allocation3], 1 }
  0x94   :  { %425 = vsyncpa [#allocation3 + $0x1], 1 }
  0x95   :  { %426 = vsyncpa [#allocation6], 1 }
  0x96   :  { %428 = vsyncpa [#allocation6 + $0x1], 1 }
  0x97   :  { %429 = vsyncpa [#allocation4], 1 }
  0x98   :  { %431 = vsyncpa [#allocation4 + $0x1], 1 }

</bundles_post_ra>
